<compile_context>
chip_gen: v6e
topology: v6e:2x2x1
jax: 0.10.0
libtpu: 0.0.40
codegen_flags: <defaults>
</compile_context>

<pallas_src>
import functools

import jax
import jax.numpy as jnp
from jax.experimental import pallas as pl
from jax.experimental.pallas import tpu as pltpu

_LANE = 128  # lane width (last dim)


def _round_up(x, m):
    return ((x + m - 1) // m) * m


def _sublane_pack(dtype):
    """Sublane packing of a vreg for this dtype (8 x 32-bit base)."""
    return {4: 8, 2: 16, 1: 32}.get(jnp.dtype(dtype).itemsize, 8)


def _default_row_tile():
    """Per-chip row-tile default.

    v7x HBM (~3.2 TB/s per TC) drains a tile ~2x faster than v6e, so the fixed
    ~0.35us per-grid-step overhead bites twice as hard -> use ~2x bigger tiles.
    Footprint at these feature widths is only a few MiB, far under 32 MiB.
    """
    try:
        kind = jax.devices()[0].device_kind.lower()
    except Exception:  # pragma: no cover - CPU/interpret fallbacks
        kind = ""
    return 4096 if "v7" in kind else 2048


def _mlp_plain_kernel(h_ref, w1_ref, b1_ref, w2_ref, b2_ref, y_ref):
    """Fused y = relu(h @ w1 + b1) @ w2 + b2 for one [tm, h_size] row tile."""
    z = jnp.dot(h_ref[...], w1_ref[...], preferred_element_type=jnp.float32)
    a = jnp.maximum(z + b1_ref[...].astype(jnp.float32), 0.0)
    # NOTE: for bf16 weights the f32 ReLU activations are downcast to bf16
    # before the second matmul (intentional precision tradeoff; f32 accum).
    y = jnp.dot(a.astype(w2_ref.dtype), w2_ref[...],
                preferred_element_type=jnp.float32)
    y_ref[...] = (y + b2_ref[...].astype(jnp.float32)).astype(y_ref.dtype)


@functools.partial(jax.jit, static_argnames=("row_tile",))
def _mlp_plain_forward_impl(h, w1, b1, w2, b2, row_tile):
    lead_shape = h.shape[:-1]
    h_size = h.shape[-1]
    emb_size = w1.shape[1]
    y_size = w2.shape[1]

    n_rows = 1
    for d in lead_shape:
        n_rows *= d
    n_rows = max(n_rows, 1)

    sub = _sublane_pack(h.dtype)
    row_tile = max(_round_up(row_tile, sub), sub)

    # Row tile: at most row_tile, a multiple of the dtype's sublane pack, and
    # small enough that the grid has >= 2 steps whenever possible so the
    # "parallel" row axis can be sharded across v7x's two TensorCores.
    if n_rows <= sub:
        tm = sub
    else:
        tm = min(row_tile, _round_up(pl.cdiv(n_rows, 2), sub))
    grid = pl.cdiv(n_rows, tm)

    # h streamed at its true width; no row padding (ragged last block is
    # masked on store).  reshape of a contiguous array is metadata-only.
    h2d = h.reshape(n_rows, h_size)
    n_rows_in = n_rows
    if tm > n_rows:  # only when n_rows < one sublane pack: pad a few rows
        h2d = jnp.pad(h2d, ((0, tm - n_rows), (0, 0)))
        n_rows_in = tm

    # Only the tiny resident weights get lane padding on the embedding dim so
    # the fused intermediate is lane-dense.  Output stays at true y_size.
    e_p = _round_up(emb_size, _LANE)
    w1_p = jnp.pad(w1, ((0, 0), (0, e_p - emb_size)))
    b1_p = jnp.pad(b1, (0, e_p - emb_size)).reshape(1, e_p)
    w2_p = jnp.pad(w2, ((0, e_p - emb_size), (0, 0)))
    b2_p = b2.reshape(1, y_size)

    y2d = pl.pallas_call(
        _mlp_plain_kernel,
        out_shape=jax.ShapeDtypeStruct((n_rows_in, y_size), h.dtype),
        grid_spec=pltpu.PrefetchScalarGridSpec(
            num_scalar_prefetch=0,
            grid=(grid,),
            in_specs=[
                # Row stream: new tile per grid step (default double-buffered;
                # bandwidth-bound, so no deeper Buffered(n) pipelining).
                pl.BlockSpec((tm, h_size), lambda i: (i, 0)),
                # Weights / biases: constant block index -> resident in VMEM.
                pl.BlockSpec((h_size, e_p), lambda i: (0, 0)),
                pl.BlockSpec((1, e_p), lambda i: (0, 0)),
                pl.BlockSpec((e_p, y_size), lambda i: (0, 0)),
                pl.BlockSpec((1, y_size), lambda i: (0, 0)),
            ],
            out_specs=pl.BlockSpec((tm, y_size), lambda i: (i, 0)),
        ),
        compiler_params=pltpu.CompilerParams(
            # Rows are independent: shard the grid across TensorCores (v7x).
            dimension_semantics=("parallel",),
            # Footprint at tm=4096 with these widths is only a few MiB;
            # 32 MiB is safe on v5e/v6e (128 MiB) and v7x (64 MiB) alike.
            vmem_limit_bytes=32 * 1024 * 1024,
        ),
    )(h2d, w1_p, b1_p, w2_p, b2_p)

    if n_rows_in > n_rows:
        y2d = y2d[:n_rows]
    return y2d.reshape(*lead_shape, y_size)


def mlp_plain_forward(h, w1, b1, w2, b2, *, row_tile=None):
    """Applies the MLPPlain forward pass.

    h:  [..., h_size]
    w1: [h_size, embedding_size]   (pre-transposed vs. PyTorch's [out, in])
    b1: [embedding_size]
    w2: [embedding_size, y_size]
    b2: [y_size]
    returns y: [..., y_size]

    For large-N f32 inputs on v5e, a bf16 storage path for h / weights (f32
    accumulation is already done in-kernel) halves HBM bytes — caller's choice.
    """
    if row_tile is None:
        row_tile = _default_row_tile()
    return _mlp_plain_forward_impl(h, w1, b1, w2, b2, int(row_tile))


def _mlp_plain_reference(h, w1, b1, w2, b2):
    """Pure-JAX fp32 reference of the same math."""
    hf = h.astype(jnp.float32)
    z = jnp.dot(hf, w1.astype(jnp.float32),
                precision=jax.lax.Precision.HIGHEST) + b1.astype(jnp.float32)
    a = jnp.maximum(z, 0.0)
    return jnp.dot(a, w2.astype(jnp.float32),
                   precision=jax.lax.Precision.HIGHEST) + b2.astype(jnp.float32)


def _xavier_uniform(key, shape, gain):
    """Matches nn.init.xavier_uniform_ (fan_in/fan_out symmetric under transpose)."""
    fan_in, fan_out = shape[0], shape[1]
    bound = gain * jnp.sqrt(6.0 / (fan_in + fan_out))
    return jax.random.uniform(key, shape, jnp.float32, -bound, bound)


def init_mlp_plain_params(key, h_size, embedding_size, y_size):
    gain = jnp.sqrt(2.0)  # nn.init.calculate_gain('relu')
    k1, k2, k3, k4 = jax.random.split(key, 4)
    w1 = _xavier_uniform(k1, (h_size, embedding_size), gain)
    w2 = _xavier_uniform(k2, (embedding_size, y_size), gain)
    # PyTorch Linear biases keep their default init: U(-1/sqrt(fan_in), +).
    b1 = jax.random.uniform(
        k3, (embedding_size,), jnp.float32,
        -1.0 / jnp.sqrt(h_size), 1.0 / jnp.sqrt(h_size))
    b2 = jax.random.uniform(
        k4, (y_size,), jnp.float32,
        -1.0 / jnp.sqrt(embedding_size), 1.0 / jnp.sqrt(embedding_size))
    return w1, b1, w2, b2


if __name__ == "__main__":
    h_size, embedding_size, y_size = 32, 64, 16
    key = jax.random.PRNGKey(0)
    k_params, k_small, k_big = jax.random.split(key, 3)
    w1, b1, w2, b2 = init_mlp_plain_params(k_params, h_size, embedding_size, y_size)

    # --- Small case (GraphRNN-style h = (batch, seq, h_size)): 16 rows. ---
    batch, seq = 2, 8
    h_small = jax.random.normal(k_small, (batch, seq, h_size), jnp.float32)
    y_small = jax.block_until_ready(mlp_plain_forward(h_small, w1, b1, w2, b2))
    ref_small = _mlp_plain_reference(h_small, w1, b1, w2, b2)
    assert y_small.shape == (batch, seq, y_size)
    assert jnp.allclose(y_small, ref_small, atol=1e-4, rtol=1e-4)

    # --- Larger case: 1300 rows -> 2 grid steps with a ragged final block. ---
    batch2, seq2 = 4, 325
    h_big = jax.random.normal(k_big, (batch2, seq2, h_size), jnp.float32)
    y_big = jax.block_until_ready(mlp_plain_forward(h_big, w1, b1, w2, b2))
    ref_big = _mlp_plain_reference(h_big, w1, b1, w2, b2)
    assert y_big.shape == (batch2, seq2, y_size)
    assert jnp.allclose(y_big, ref_big, atol=1e-4, rtol=1e-4)

    # --- bf16 operands to the MXU with f32 accumulation (precision tradeoff). ---
    y_bf16 = jax.block_until_ready(
        mlp_plain_forward(h_big.astype(jnp.bfloat16),
                          w1.astype(jnp.bfloat16), b1,
                          w2.astype(jnp.bfloat16), b2))
    assert y_bf16.dtype == jnp.bfloat16
    assert jnp.allclose(y_bf16.astype(jnp.float32), ref_big, atol=1e-1, rtol=1e-1)

    print("KERNEL_OK")
</pallas_src>

<mosaic_0001>
module attributes {stable_mosaic.version = 11 : i64} {
  func.func @_mlp_plain_kernel(%arg0: i32, %arg1: memref<8x32xf32, #tpu.memory_space<vmem>>, %arg2: memref<32x128xf32, #tpu.memory_space<vmem>>, %arg3: memref<1x128xf32, #tpu.memory_space<vmem>>, %arg4: memref<128x16xf32, #tpu.memory_space<vmem>>, %arg5: memref<1x16xf32, #tpu.memory_space<vmem>>, %arg6: memref<8x16xf32, #tpu.memory_space<vmem>>) attributes {dimension_semantics = [#tpu.dimension_semantics<parallel>], iteration_bounds = array<i64: 2>, scalar_prefetch = 0 : i64, scratch_operands = 0 : i64, tpu.core_type = #tpu.core_type<tc>, window_params = [{transform_indices = @transform_0, window_bounds = array<i64: 8, 32>}, {pipeline_mode = #tpu.pipeline_mode<synchronous>, transform_indices = @transform_1, window_bounds = array<i64: 32, 128>}, {pipeline_mode = #tpu.pipeline_mode<synchronous>, transform_indices = @transform_2, window_bounds = array<i64: 1, 128>}, {pipeline_mode = #tpu.pipeline_mode<synchronous>, transform_indices = @transform_3, window_bounds = array<i64: 128, 16>}, {pipeline_mode = #tpu.pipeline_mode<synchronous>, transform_indices = @transform_4, window_bounds = array<i64: 1, 16>}, {transform_indices = @transform_5, window_bounds = array<i64: 8, 16>}]} {
    %c0 = arith.constant 0 : index
    %c0_0 = arith.constant 0 : index
    %0 = vector.load %arg1[%c0, %c0_0] : memref<8x32xf32, #tpu.memory_space<vmem>>, vector<8x32xf32>
    %c0_1 = arith.constant 0 : index
    %c0_2 = arith.constant 0 : index
    %1 = vector.load %arg2[%c0_1, %c0_2] : memref<32x128xf32, #tpu.memory_space<vmem>>, vector<32x128xf32>
    %cst = arith.constant dense<0.000000e+00> : vector<8x128xf32>
    %2 = tpu.matmul %0, %1, %cst {dimension_numbers = #tpu.dot_dimension_numbers<[1], [0], [0], [1], [0, 0, 1, 1], [], []>} : vector<8x32xf32>, vector<32x128xf32>, vector<8x128xf32> -> vector<8x128xf32>
    %c0_3 = arith.constant 0 : index
    %c0_4 = arith.constant 0 : index
    %3 = vector.load %arg3[%c0_3, %c0_4] : memref<1x128xf32, #tpu.memory_space<vmem>>, vector<1x128xf32>
    %4 = vector.broadcast %3 : vector<1x128xf32> to vector<8x128xf32>
    %5 = arith.addf %2, %4 : vector<8x128xf32>
    %cst_5 = arith.constant 0.000000e+00 : f32
    %6 = vector.broadcast %cst_5 : f32 to vector<8x128xf32>
    %7 = arith.maximumf %5, %6 : vector<8x128xf32>
    %c0_6 = arith.constant 0 : index
    %c0_7 = arith.constant 0 : index
    %8 = vector.load %arg4[%c0_6, %c0_7] : memref<128x16xf32, #tpu.memory_space<vmem>>, vector<128x16xf32>
    %cst_8 = arith.constant dense<0.000000e+00> : vector<8x16xf32>
    %9 = tpu.matmul %7, %8, %cst_8 {dimension_numbers = #tpu.dot_dimension_numbers<[1], [0], [0], [1], [0, 0, 1, 1], [], []>} : vector<8x128xf32>, vector<128x16xf32>, vector<8x16xf32> -> vector<8x16xf32>
    %c0_9 = arith.constant 0 : index
    %c0_10 = arith.constant 0 : index
    %10 = vector.load %arg5[%c0_9, %c0_10] : memref<1x16xf32, #tpu.memory_space<vmem>>, vector<1x16xf32>
    %11 = vector.broadcast %10 : vector<1x16xf32> to vector<8x16xf32>
    %12 = arith.addf %9, %11 : vector<8x16xf32>
    %c0_11 = arith.constant 0 : index
    %c0_12 = arith.constant 0 : index
    %13 = vector.load %arg6[%c0_11, %c0_12] : memref<8x16xf32, #tpu.memory_space<vmem>>, vector<8x16xf32>
    tpu.vector_store %arg6[%c0_11, %c0_12], %12 {strides = array<i32>} : memref<8x16xf32, #tpu.memory_space<vmem>>, vector<8x16xf32>,
    return
  }
  func.func @transform_0(%arg0: i32) -> (i32, i32) {
    %c0_i32 = arith.constant 0 : i32
    %c0_i32_0 = arith.constant 0 : i32
    return %arg0, %c0_i32 : i32, i32
  }
  func.func @transform_1(%arg0: i32) -> (i32, i32) {
    %c0_i32 = arith.constant 0 : i32
    %c0_i32_0 = arith.constant 0 : i32
    %c0_i32_1 = arith.constant 0 : i32
    return %c0_i32, %c0_i32_0 : i32, i32
  }
  func.func @transform_2(%arg0: i32) -> (i32, i32) {
    %c0_i32 = arith.constant 0 : i32
    %c0_i32_0 = arith.constant 0 : i32
    %c0_i32_1 = arith.constant 0 : i32
    return %c0_i32, %c0_i32_0 : i32, i32
  }
  func.func @transform_3(%arg0: i32) -> (i32, i32) {
    %c0_i32 = arith.constant 0 : i32
    %c0_i32_0 = arith.constant 0 : i32
    %c0_i32_1 = arith.constant 0 : i32
    return %c0_i32, %c0_i32_0 : i32, i32
  }
  func.func @transform_4(%arg0: i32) -> (i32, i32) {
    %c0_i32 = arith.constant 0 : i32
    %c0_i32_0 = arith.constant 0 : i32
    %c0_i32_1 = arith.constant 0 : i32
    return %c0_i32, %c0_i32_0 : i32, i32
  }
  func.func @transform_5(%arg0: i32) -> (i32, i32) {
    %c0_i32 = arith.constant 0 : i32
    %c0_i32_0 = arith.constant 0 : i32
    return %arg0, %c0_i32 : i32, i32
  }
}

</mosaic_0001>

<bundles_post_ra>
// kernel: _mlp_plain_forward_impl.1
= control target key start
LH: loop header
LB: loop body
LE: loop exit
PB: predicated region body
PF: predicated region fallthrough
CT: control target
= control target key end

     0   :  { %10 = vsyncpa [#allocation3], 0  ;;  %s875_s0 = inlined_call_operand.vmem [shape: f32[16,32], index: 0, kind: input, shape index: {}]   ;;  %s876_s1 = inlined_call_operand.vmem [shape: f32[32,128], index: 1, kind: input, shape index: {}]   ;;  %s877_s2 = inlined_call_operand.vmem [shape: f32[1,128], index: 2, kind: input, shape index: {}]   ;;  %s878_s3 = inlined_call_operand.vmem [shape: f32[128,16], index: 3, kind: input, shape index: {}]   ;;  %s879_s4 = inlined_call_operand.vmem [shape: f32[1,16], index: 4, kind: input, shape index: {}]   ;;  %s880_s5 = inlined_call_operand.hbm [shape: f32[16,16], index: 5, kind: output, shape index: {}]  }
   0x1   :  { %12 = vsyncpa [#allocation3 + $0x1], 0  ;;  %s692_s18 = smov 0   ;;  %s694_s19 = smov 0  }
   0x2   :  { %s696_s20 = smov 0   ;;  %s698_s21 = smov 0  }
   0x3 LB: > { %s713_s22 = sadd.s32 4294967295, %s657_s21   ;;  %s475_s23 = sadd.s32 4294967294, %s657_s21   ;;  %s657_s21 = sphi %s698_s21, %s886_s21   ;;  %s653_s20 = sphi %s696_s20, %s885_s20   ;;  %s649_s19 = sphi %s694_s19, %s884_s19   ;;  %s645_s18 = sphi %s692_s18, %s883_s18  }
   0x4   : > { %s717_s24 = sadd.s32 1, %s657_s21   ;;  %s135_s25 = sadd.s32 1, %s653_s20 }
   0x5   : > { %s132_s26 = ssub.s32 %s657_s21, %s717_s24  ;;  %p145_p0 = scmp.ne.s32.totalorder %s653_s20, %s649_s19 }
   0x6   : > { %p133_p1 = scmp.eq.s32.totalorder %s132_s26, 0  ;;  %p146_p2 = scmp.eq.s32.totalorder %s713_s22, 1 }
   0x7   : > { %p151_p3 = scmp.ne.s32.totalorder %s649_s19, %s645_s18  ;;  %p152_p4 = scmp.eq.s32.totalorder %s475_s23, 1 }
   0x8   : > { %s728_s27 = scalar_select %p133_p1, %s653_s20, %s135_s25  }
   0x9   : > { %p730_p5 = por %p146_p2, %p145_p0  ;;  %p734_p6 = por %p152_p4, %p151_p3 }
   0xa   : > { %p478_p7 = scmp.ge.s32.totalorder %s657_s21, 1  ;;  %p189_p8 = scmp.lt.s32.totalorder %s657_s21, 3 }
   0xc   : > { %p190_p9 = pnand %p478_p7, %p189_p8 }
   0xd   : > { %p216_p10 = scmp.lt.s32.totalorder (!%p190_p9), %s713_s22, 1  ;;  %s213_s26 = sand.u32 (!%p190_p9), 1, %s649_s19  }
   0xe   : > { %193 = sbr.rel (%p190_p9) target bundleno = 433 (0x1b1), region = 40  ;;  %s479_s30 = sshll.u32 (!%p190_p9), %s213_s26, 3 }
   0xf   : > { %s485_s8 = sshll.u32 (!%p190_p9), %s713_s22, 7  ;;  %s215_s9 = scalar_lea.vmem (!%p190_p9), [#allocation2], %s479_s30 }
  0x10   : > { %s416_s10 = sshll.u32 (!%p190_p9), %s215_s9, 4  ;;  %s840_s13 = scalar_lea.hbm (!%p190_p9), %s880_s5, %s485_s8  ;;  %s417_s10 = int_to_ptr.vmem [resolvable:$true] %s416_s10 }
  0x11   : > { %s403_s14 = scalar_lea.sflag (!%p190_p9), [#allocation3], %s213_s26  ;;  %s597_s15 = scalar_lea.vmem (!%p190_p9), %s417_s10, 128 }
  0x12   : > { %p598_p11 = scmp.ne.s32.totalorder (!%p190_p9), %s417_s10, %s597_s15 }
  0x13   : > { %v224_v0 = vld [vmem:[%s876_s1 + $0x18] sm:$0xff]  ;;  %v659_v1 = vmov 0.0   ;;  %v223_v2 = vld [vmem:[%s876_s1 + $0x10] sm:$0xff]  ;;  %vm660_vm0 = vmmov 0   ;;  %s217_s11 = scalar_select %p216_p10, %s713_s22, 1  ;;  %v222_v5 = vld [vmem:[%s876_s1 + $0x8] sm:$0xff] }
  0x14   : > { %510 = vmatprep.subr.mxu0 %v659_v1  ;;  %518 = vmatprep.mubr.msk.f32.mxu0 %vm660_vm0, %v659_v1  ;;  %v322_v3 = vld [vmem:[%s878_s3 + $0x78] sm:$0xff]  ;;  %v321_v4 = vld [vmem:[%s878_s3 + $0x70] sm:$0xff]  ;;  %v320_v6 = vld [vmem:[%s878_s3 + $0x68] sm:$0xff]  ;;  %vm232_vm1 = vcmask 261120   ;;  %vm400_vm2 = vcmask 130048   ;;  %p599_p12 = pnand %p598_p11, %p730_p5  ;;  %s661_s22 = smov [#allocation2]  }
  0x15   : > { %511 = vmatpush3.msra.mxu0 %v224_v0  ;;  %521 = vmatprep.subr.mxu1 %v659_v1  ;;  %s480_s16 = sshll.u32 %s217_s11, 3  ;;  %v221_v7 = vld [vmem:[%s876_s1] sm:$0xff]  ;;  %v318_v10 = vld [vmem:[%s878_s3 + $0x58] sm:$0xff]  ;;  %v317_v11 = vld [vmem:[%s878_s3 + $0x50] sm:$0xff] }
  0x16   : > { %512 = vmatprep.subr.mxu0 %v659_v1  ;;  %522 = vmatpush3.msra.mxu1 %v322_v3  ;;  %s219_s7 = scalar_lea.vmem %s875_s0, %s480_s16  ;;  %v319_v9 = vld [vmem:[%s878_s3 + $0x60] sm:$0xff]  ;;  %v316_v12 = vld [vmem:[%s878_s3 + $0x48] sm:$0xff]  ;;  %v314_v14 = vld [vmem:[%s878_s3 + $0x38] sm:$0xff]  ;;  %p600_p13 = pneg %p599_p12 }
  0x17   : > { %513 = vmatpush3.msra.mxu0 %v223_v2  ;;  %523 = vmatprep.subr.mxu1 %v659_v1  ;;  %v220_v8 = vld [vmem:[%s219_s7] sm:$0xff]  ;;  %v313_v15 = vld [vmem:[%s878_s3 + $0x30] sm:$0xff]  ;;  %v312_v16 = vld [vmem:[%s878_s3 + $0x28] sm:$0xff]  ;;  %s601_s16 = sshll.u32 %s661_s22, 4  ;;  %s602_s16 = int_to_ptr.vmem [resolvable:$false] %s601_s16 }
  0x18   : > { %514 = vmatprep.subr.mxu0 %v659_v1  ;;  %524 = vmatpush3.msra.mxu1 %v321_v4  ;;  %v315_v13 = vld [vmem:[%s878_s3 + $0x40] sm:$0xff]  ;;  %v310_v18 = vld [vmem:[%s878_s3 + $0x18] sm:$0xff]  ;;  %v309_v19 = vld [vmem:[%s878_s3 + $0x10] sm:$0xff]  ;;  %s603_s17 = scalar_lea.vmem %s602_s16, 256  ;;  %p604_p0 = scmp.lt.s32.totalorder %s417_s10, %s602_s16 }
  0x19   : > { %515 = vmatpush3.msra.mxu0 %v222_v5  ;;  %525 = vmatprep.subr.mxu1 %v659_v1  ;;  %v311_v17 = vld [vmem:[%s878_s3 + $0x20] sm:$0xff]  ;;  %v308_v20 = vld [vmem:[%s878_s3 + $0x8] sm:$0xff]  ;;  %p605_p1 = scmp.lt.s32.totalorder %s603_s17, %s597_s15 }
  0x1a   : > { %516 = vmatprep.subr.mxu0 %v659_v1  ;;  %526 = vmatpush3.msra.mxu1 %v320_v6  ;;  %v307_v21 = vld [vmem:[%s878_s3] sm:$0xff] }
  0x1b   : > { %517 = vmatpush3.msra.mxu0 %v221_v7  ;;  %527 = vmatprep.subr.mxu1 %v659_v1  ;;  %v481_v22 = vld [vmem:[%s877_s2] ss:$0 sm:$0xff]  ;;  %p606_p2 = por %p605_p1, %p604_p0 }
  0x1c   : > { %519 = vmatmul.mubr.msk.f32.vlgmr.msra.gmra.mxu0 %vm232_vm1, %v220_v8  ;;  %528 = vmatpush3.msra.mxu1 %v319_v9  ;;  %v483_v27 = vld [vmem:[%s879_s4] ss:$0 sm:$0xff] }
  0x1d   : > { %529 = vmatprep.subr.mxu1 %v659_v1  ;;  %553 = vmatprep.mubr.msk.f32.mxu1 %vm660_vm0, %v659_v1  ;;  %p607_p3 = pnand %p606_p2, %p600_p13 }
  0x1e   : > { %530 = vmatpush3.msra.mxu1 %v318_v10 }
  0x1f   : > { %531 = vmatprep.subr.mxu1 %v659_v1 }
  0x20   : > { %532 = vmatpush3.msra.mxu1 %v317_v11 }
  0x21   : > { %533 = vmatprep.subr.mxu1 %v659_v1 }
  0x22   : > { %534 = vmatpush3.msra.mxu1 %v316_v12 }
  0x23   : > { %535 = vmatprep.subr.mxu1 %v659_v1 }
  0x24   : > { %536 = vmatpush3.msra.mxu1 %v315_v13 }
  0x25   : > { %537 = vmatprep.subr.mxu1 %v659_v1 }
  0x26   : > { %538 = vmatpush3.msra.mxu1 %v314_v14 }
  0x27   : > { %539 = vmatprep.subr.mxu1 %v659_v1 }
  0x28   : > { %540 = vmatpush3.msra.mxu1 %v313_v15 }
  0x29   : > { %541 = vmatprep.subr.mxu1 %v659_v1 }
  0x2a   : > { %542 = vmatpush3.msra.mxu1 %v312_v16 }
  0x2b   : > { %543 = vmatprep.subr.mxu1 %v659_v1 }
  0x2c   : > { %544 = vmatpush3.msra.mxu1 %v311_v17 }
  0x2d   : > { %545 = vmatprep.subr.mxu1 %v659_v1 }
  0x2e   : > { %546 = vmatpush3.msra.mxu1 %v310_v18 }
  0x2f   : > { %547 = vmatprep.subr.mxu1 %v659_v1 }
  0x30   : > { %548 = vmatpush3.msra.mxu1 %v309_v19 }
  0x31   : > { %549 = vmatprep.subr.mxu1 %v659_v1 }
  0x32   : > { %550 = vmatpush3.msra.mxu1 %v308_v20 }
  0x33   : > { %551 = vmatprep.subr.mxu1 %v659_v1 }
  0x34   : > { %552 = vmatpush3.msra.mxu1 %v307_v21 }
  0xdc   : > { %v302_v23 = vpop.f32.mrf.mxu0 }
  0xdd   : > { %v303_v24 = vadd.f32 %v481_v22, %v302_v23 }
  0xde   : > { %v520_v25 = vpop.f32.mrf.mxu0 }
  0xdf   : > { %v306_v26 = vmax.f32 %v303_v24, 0.0 }
  0xe1   : > { %554 = vmatmul.mubr.f32.vlgmr.msra.gmra.mxu1 %v306_v26 }
 0x1a1   : > { %v396_v28 = vpop.f32.mrf.mxu1 }
 0x1a2   : > { %v397_v29 = vadd.f32 %v483_v27, %v396_v28 }
 0x1a3   : > { %v555_v30 = vpop.f32.mrf.mxu1 }
 0x1a4   : > { %401 = vst.msk [vmem:[%s215_s9] sm:$0xff] %vm400_vm2, %v397_v29 }
 0x1a5   : > { %610 = shalt.err (!%p607_p3)
}
 0x1a6   : > { %s611_s23 = scalar_lea.hbm %s840_s13, 128  ;;  %s615_s30 = scalar_lea.hbm %s880_s5, 256 }
 0x1a7   : > { %p612_p4 = scmp.ne.s32.totalorder %s840_s13, %s611_s23  ;;  %p616_p9 = scmp.lt.s32.totalorder %s840_s13, %s880_s5 }
 0x1a8   : > { %p617_p10 = scmp.lt.s32.totalorder %s615_s30, %s611_s23 }
 0x1a9   : > { %p613_p7 = pnand %p612_p4, %p730_p5 }
 0x1aa   : > { %p618_p11 = por %p617_p10, %p616_p9 }
 0x1ab   : > { %p614_p8 = pneg %p613_p7 }
 0x1ad   : > { %p619_p12 = pnand %p618_p11, %p614_p8 }
 0x1af   : > { %622 = shalt.err (!%p619_p12)
}
 0x1b0   : > { %556 = dma.vmem_to_hbm [thread:$0]  (%p730_p5), %s417_s10, 128, %s840_s13, %s403_s14  }
 0x1b1 PF: > { %p562_p13 = scmp.ge.s32.totalorder %s657_s21, 2  ;;  %s428_s8 = sand.u32 1, %s645_s18  }
 0x1b2   : > { %s429_s9 = scalar_lea.sflag [#allocation3], %s428_s8 }
 0x1b3   : > { %p559_p0 = pnand %p562_p13, %p734_p6 }
 0x1b5   : > { %p560_p1 = pneg %p559_p0 }
 0x1b7   : > { %640 = dma.done.wait (%p560_p1), %s429_s9, 128  }
 0x1b8   : > { %642 = vsyncadd (%p560_p1), %s429_s9, 4294967168  ;;  %p15_p2 = scmp.ge.s32.totalorder %s717_s24, 4   ;;  %s883_s18 = smov %s649_s19 }
 0x1b9   : > { %s884_s19 = smov %s653_s20  ;;  %s885_s20 = smov %s728_s27 }
 0x1ba   : > { %s886_s21 = smov %s717_s24  ;;  %17 = sbr.rel (!%p15_p2) target bundleno = 3 (0x3), region = 75 }
 0x1bf   :  { %434 = vsyncpa [#allocation3], 1 }
 0x1c0   :  { %436 = vsyncpa [#allocation3 + $0x1], 1 }

</bundles_post_ra>
